<compile_context>
chip_gen: v7x
topology: tpu7x:2x2x1
jax: 0.10.0
libtpu: 0.0.40
codegen_flags: <defaults>
</compile_context>

<pallas_src>
import functools

import jax
import jax.numpy as jnp
from jax.experimental import pallas as pl
from jax.experimental.pallas import tpu as pltpu


def _roll_lanes(x, shift, lanes):
    """result[:, l] = x[:, (l - shift) % lanes]  (jnp.roll semantics along axis 1)."""
    if shift % lanes == 0:
        return x
    if lanes % 128 == 0:
        return pltpu.roll(x, shift, axis=1)   # XLU lane rotate, no hidden copies
    return jnp.roll(x, shift, axis=1)         # odd lane count: concat-of-slices fallback


def _maxpool_stride1_kernel(x_ref, o_ref, *, H, W):
    # Block shape: (rows, H*W). Each row is one (n, c) image flattened row-major, so
    # lane l corresponds to (i, j) = (l // W, l % W).
    x = x_ref[...]
    L = H * W

    lane = jax.lax.broadcasted_iota(jnp.int32, (1, L), 1)
    col_is_last = (lane % W) == (W - 1)        # j == W-1 -> replicate right edge
    row_is_last = lane >= (H - 1) * W          # i == H-1 -> replicate bottom edge

    # Neighbor at (i, j+1): lane l+1 == roll by L-1; keep x where j == W-1.
    x_right = _roll_lanes(x, L - 1, L)
    m = jnp.maximum(x, jnp.where(col_is_last, x, x_right))
    # Neighbor at (i+1, j): lane l+W == roll by L-W; keep m on the last image row.
    m_down = _roll_lanes(m, L - W, L)
    o_ref[...] = jnp.maximum(m, jnp.where(row_is_last, m, m_down))


def _pick_row_block(nc, l, dtype):
    """Images (rows) per grid step for the (NC, H*W) layout.

    Targets ~4 MiB blocks (big blocks amortize the ~0.35 us/step overhead for an
    HBM-bound kernel), keeps blocks >= ~1 MiB when splitting so the DMA pipeline has
    overlap, aims for >= ~8 grid steps and an even step count (v7x 2-TC balance), and
    aligns rows to the dtype's sublane packing.
    """
    itemsize = jnp.dtype(dtype).itemsize
    sub = max(8, 32 // itemsize)                     # 8 f32 / 16 bf16 / 32 int8
    row_bytes = pl.cdiv(l, 128) * 128 * itemsize     # VMEM lane padding

    target_block = 4 << 20                           # ~4 MiB; x4 double-buffered in+out
    min_block = 1 << 20                              # don't shrink blocks below ~1 MiB

    if nc <= sub or nc * row_bytes <= 2 * min_block:
        return nc                                    # tiny input: one full-dim block

    fit = max(sub, (target_block // row_bytes) // sub * sub)    # VMEM budget
    min_rows = max(sub, (min_block // row_bytes) // sub * sub)  # pipeline floor
    steps_rows = max(sub, pl.cdiv(pl.cdiv(nc, 8), sub) * sub)   # aim for >= ~8 steps
    rows = min(fit, max(min_rows, steps_rows), nc)

    # Prefer an even number of grid steps so both v7x TensorCores get balanced work.
    steps = pl.cdiv(nc, rows)
    if steps > 1 and steps % 2 == 1:
        alt = max(sub, pl.cdiv(pl.cdiv(nc, steps + 1), sub) * sub)
        if pl.cdiv(nc, alt) % 2 == 0:
            rows = alt
    return rows


def maxpool_stride1(x):
    """x: (N, C, H, W) -> (N, C, H, W); replicate-pad 2x2 max pool, stride 1."""
    N, C, H, W = x.shape
    NC, L = N * C, H * W
    itemsize = jnp.dtype(x.dtype).itemsize
    x2 = x.reshape(NC, L)                            # zero-copy layout plumbing

    rows = _pick_row_block(NC, L, x.dtype)
    grid = (pl.cdiv(NC, rows),)

    kernel = functools.partial(_maxpool_stride1_kernel, H=H, W=W)
    out2 = pl.pallas_call(
        kernel,
        out_shape=jax.ShapeDtypeStruct((NC, L), x.dtype),
        grid_spec=pltpu.PrefetchScalarGridSpec(
            num_scalar_prefetch=0,
            grid=grid,
            in_specs=[pl.BlockSpec((rows, L), lambda i: (i, 0))],
            out_specs=pl.BlockSpec((rows, L), lambda i: (i, 0)),
        ),
        compiler_params=pltpu.CompilerParams(
            dimension_semantics=("parallel",),       # shard grid steps across v7x's 2 TCs
            vmem_limit_bytes=48 * 1024 * 1024,       # fits v7x's 64 MiB VMEM with headroom
        ),
        cost_estimate=pl.CostEstimate(
            flops=3 * NC * L,                        # 3 max ops per output element
            transcendentals=0,
            bytes_accessed=2 * NC * L * itemsize,    # HBM-bound: 1 read + 1 write
        ),
    )(x2)
    return out2.reshape(N, C, H, W)


def _reference(x):
    # Pure-JAX reference of the PyTorch semantics (replicate pad + 2x2 max, stride 1).
    xp = jnp.pad(x, ((0, 0), (0, 0), (0, 1), (0, 1)), mode="edge")
    return jnp.maximum(
        jnp.maximum(xp[:, :, :-1, :-1], xp[:, :, :-1, 1:]),
        jnp.maximum(xp[:, :, 1:, :-1], xp[:, :, 1:, 1:]),
    )


if __name__ == "__main__":
    key = jax.random.PRNGKey(0)

    # Primary (spec-sized) test: lane-dense path (H*W % 128 == 0), single block.
    x = jax.random.normal(key, (2, 4, 16, 16), dtype=jnp.float32)
    out = maxpool_stride1(x)
    jax.block_until_ready(out)
    assert out.shape == x.shape
    assert jnp.allclose(out, _reference(x)), "mismatch vs reference (16x16)"

    # Real darknet shape 13x13: odd lane count -> masked-store / jnp.roll fallback path.
    x13 = jax.random.normal(jax.random.fold_in(key, 1), (1, 3, 13, 13), dtype=jnp.float32)
    out13 = maxpool_stride1(x13)
    jax.block_until_ready(out13)
    assert jnp.allclose(out13, _reference(x13)), "mismatch vs reference (13x13)"

    # Multi-step grid with a ragged last block (exercises the pipelined tiling path).
    xb = jax.random.normal(jax.random.fold_in(key, 2), (8, 125, 32, 32), dtype=jnp.float32)
    outb = maxpool_stride1(xb)
    jax.block_until_ready(outb)
    assert jnp.allclose(outb, _reference(xb)), "mismatch vs reference (ragged multi-block)"

    print("KERNEL_OK")
</pallas_src>

<mosaic_0001>
module attributes {stable_mosaic.version = 11 : i64} {
  func.func @_maxpool_stride1_kernel(%arg0: i32, %arg1: memref<8x256xf32, #tpu.memory_space<vmem>>, %arg2: memref<8x256xf32, #tpu.memory_space<vmem>>) attributes {dimension_semantics = [#tpu.dimension_semantics<parallel>], iteration_bounds = array<i64: 1>, scalar_prefetch = 0 : i64, scratch_operands = 0 : i64, tpu.core_type = #tpu.core_type<tc>, window_params = [{transform_indices = @transform_0, window_bounds = array<i64: 8, 256>}, {transform_indices = @transform_1, window_bounds = array<i64: 8, 256>}]} {
    %c0 = arith.constant 0 : index
    %c0_0 = arith.constant 0 : index
    %0 = vector.load %arg1[%c0, %c0_0] : memref<8x256xf32, #tpu.memory_space<vmem>>, vector<8x256xf32>
    %1 = tpu.iota {dimensions = array<i32: 1>} : vector<1x256xi32>
    %c16_i32 = arith.constant 16 : i32
    %c0_i32 = arith.constant 0 : i32
    %2 = arith.cmpi eq, %c16_i32, %c0_i32 : i32
    %c1_i32 = arith.constant 1 : i32
    %3 = arith.select %2, %c1_i32, %c16_i32 : i32
    %4 = vector.broadcast %3 : i32 to vector<1x256xi32>
    %5 = arith.remsi %1, %4 : vector<1x256xi32>
    %c0_i32_1 = arith.constant 0 : i32
    %6 = vector.broadcast %c0_i32_1 : i32 to vector<1x256xi32>
    %7 = arith.cmpi ne, %5, %6 : vector<1x256xi32>
    %c0_i32_2 = arith.constant 0 : i32
    %8 = vector.broadcast %c0_i32_2 : i32 to vector<1x256xi32>
    %9 = arith.cmpi slt, %5, %8 : vector<1x256xi32>
    %c0_i32_3 = arith.constant 0 : i32
    %10 = arith.cmpi slt, %3, %c0_i32_3 : i32
    %11 = vector.broadcast %10 : i1 to vector<1x256xi1>
    %12 = vector.broadcast %11 : vector<1x256xi1> to vector<1x256xi1>
    %13 = arith.xori %9, %12 : vector<1x256xi1>
    %14 = arith.andi %13, %7 : vector<1x256xi1>
    %15 = vector.broadcast %3 : i32 to vector<1x256xi32>
    %16 = arith.addi %5, %15 : vector<1x256xi32>
    %17 = arith.select %14, %16, %5 : vector<1x256xi1>, vector<1x256xi32>
    %c15_i32 = arith.constant 15 : i32
    %18 = vector.broadcast %c15_i32 : i32 to vector<1x256xi32>
    %19 = arith.cmpi eq, %17, %18 : vector<1x256xi32>
    %c240_i32 = arith.constant 240 : i32
    %20 = vector.broadcast %c240_i32 : i32 to vector<1x256xi32>
    %21 = arith.cmpi sge, %1, %20 : vector<1x256xi32>
    %c255_i32 = arith.constant 255 : i32
    %22 = tpu.dynamic_rotate %0 by %c255_i32 dim 1 : vector<8x256xf32>, i32 -> vector<8x256xf32>
    %23 = vector.shape_cast %19 : vector<1x256xi1> to vector<1x256xi1>
    %24 = vector.broadcast %23 : vector<1x256xi1> to vector<8x256xi1>
    %25 = arith.select %24, %0, %22 : vector<8x256xi1>, vector<8x256xf32>
    %26 = arith.maximumf %0, %25 : vector<8x256xf32>
    %c240_i32_4 = arith.constant 240 : i32
    %27 = tpu.dynamic_rotate %26 by %c240_i32_4 dim 1 : vector<8x256xf32>, i32 -> vector<8x256xf32>
    %28 = vector.shape_cast %21 : vector<1x256xi1> to vector<1x256xi1>
    %29 = vector.broadcast %28 : vector<1x256xi1> to vector<8x256xi1>
    %30 = arith.select %29, %26, %27 : vector<8x256xi1>, vector<8x256xf32>
    %31 = arith.maximumf %26, %30 : vector<8x256xf32>
    %c0_5 = arith.constant 0 : index
    %c0_6 = arith.constant 0 : index
    %32 = vector.load %arg2[%c0_5, %c0_6] : memref<8x256xf32, #tpu.memory_space<vmem>>, vector<8x256xf32>
    tpu.vector_store %arg2[%c0_5, %c0_6], %31 {strides = array<i32>} : memref<8x256xf32, #tpu.memory_space<vmem>>, vector<8x256xf32>,
    return
  }
  func.func @transform_0(%arg0: i32) -> (i32, i32) {
    %c0_i32 = arith.constant 0 : i32
    %c0_i32_0 = arith.constant 0 : i32
    return %arg0, %c0_i32 : i32, i32
  }
  func.func @transform_1(%arg0: i32) -> (i32, i32) {
    %c0_i32 = arith.constant 0 : i32
    %c0_i32_0 = arith.constant 0 : i32
    return %arg0, %c0_i32 : i32, i32
  }
}

</mosaic_0001>

<bundles_post_ra>
// kernel: tpu_custom_call.1
= control target key start
LH: loop header
LB: loop body
LE: loop exit
PB: predicated region body
PF: predicated region fallthrough
CT: control target
= control target key end

     0   :  { %6 = vsyncpa [#allocation3], 0  ;;  %s191_s0 = inlined_call_operand.hbm [shape: f32[8,256], index: 0, kind: input, shape index: {}]   ;;  %s192_s1 = inlined_call_operand.hbm [shape: f32[8,256], index: 1, kind: output, shape index: {}]  }
   0x1   :  { %7 = vsyncpa [#allocation4], 0  ;;  %s153_s6 = smov [#allocation2]   ;;  %s105_s10 = scalar_lea.hbm %s191_s0, 256 }
   0x2   :  { %s14_s7 = sshll.u32 %s153_s6, 4  ;;  %p106_p0 = scmp.ne.s32.totalorder %s191_s0, %s105_s10  ;;  %s15_s7 = int_to_ptr.vmem [resolvable:$true] %s14_s7 }
   0x3   :  { %p109_p1 = scmp.lt.u32.totalorder %s105_s10, %s191_s0 }
   0x5   :  { %p111_p2 = pnand %p109_p1, %p106_p0 }
   0x7   :  { %114 = shalt.err (!%p111_p2)
}
   0x8   :  { %s115_s15 = scalar_lea.vmem %s15_s7, 256  ;;  %p120_p4 = scmp.lt.s32.totalorder %s15_s7, %s15_s7 }
   0x9   :  { %p116_p3 = scmp.ne.s32.totalorder %s15_s7, %s115_s15  ;;  %p121_p5 = scmp.lt.s32.totalorder %s115_s15, %s115_s15 }
   0xb   :  { %p122_p6 = por %p121_p5, %p120_p4 }
   0xd   :  { %p123_p7 = pnand %p122_p6, %p116_p3 }
   0xf   :  { %126 = shalt.err (!%p123_p7)
}
  0x10   :  { %17 = dma.hbm_to_vmem [thread:$0]  %s191_s0, 256, %s15_s7, [#allocation3]  }
  0x11   :  { %149 = dma.done.wait [#allocation3], 256  }
  0x12   :  { %150 = vsyncadd [#allocation3], 4294967040  ;;  %v21_v0 = vld [vmem:[#allocation2] sm:$0xff]  ;;  %s154_s18 = smov 127   ;;  %v22_v1 = vld [vmem:[#allocation2 + $0x8] sm:$0xff]  ;;  %v23_v2 = vlaneseq  ;;  %s155_s0 = smov 112  }
  0x13   :  { %54 = vrot.lane.b32.xlu0 %v21_v0, %s154_s18  ;;  %s156_s19 = smov [#allocation5]  }
  0x14   :  { %v24_v3 = vand.u32 127, %v23_v2  ;;  %s92_s20 = sshll.u32 %s156_s19, 4  ;;  %s93_s20 = int_to_ptr.vmem [resolvable:$true] %s92_s20 }
  0x15   :  { %s127_s21 = scalar_lea.vmem %s93_s20, 256  ;;  %p132_p9 = scmp.lt.s32.totalorder %s93_s20, %s93_s20 }
  0x16   :  { %v25_v4 = vadd.s32 128, %v24_v3  ;;  %v30_v5 = vand.u32 15, %v24_v3  ;;  %vm58_vm0 = vcmp.lt.s32.totalorder %v24_v3, 127  ;;  %vm73_vm3 = vcmp.lt.s32.totalorder %v24_v3, 112  ;;  %p128_p8 = scmp.ne.s32.totalorder %s93_s20, %s127_s21  ;;  %p133_p10 = scmp.lt.s32.totalorder %s127_s21, %s127_s21 }
  0x17   :  { %56 = vrot.lane.b32.xlu0 %v22_v1, %s154_s18 }
  0x18   :  { %v37_v7 = vand.u32 15, %v25_v4  ;;  %vm50_vm1 = vcmp.eq.s32.totalorder %v30_v5, 15  ;;  %vm53_vm4 = vcmp.ge.s32.totalorder %v25_v4, 240  ;;  %p134_p11 = por %p133_p10, %p132_p9 }
  0x1a   :  { %vm51_vm2 = vcmp.eq.s32.totalorder %v37_v7, 15  ;;  %p135_p12 = pnand %p134_p11, %p128_p8 }
  0x85   :  { %v55_v6 = vpop.permute.xlu0 %54 }
  0x89   :  { %v57_v8 = vpop.permute.xlu0 %56 }
  0x8a   :  { %v59_v9 = vsel %vm58_vm0, %v55_v6, %v57_v8  ;;  %v60_v10 = vsel %vm58_vm0, %v57_v8, %v55_v6 }
  0x8b   :  { %v65_v11 = vsel %vm50_vm1, %v21_v0, %v59_v9  ;;  %v66_v13 = vsel %vm51_vm2, %v22_v1, %v60_v10 }
  0x8c   :  { %v67_v12 = vmax.f32 %v21_v0, %v65_v11  ;;  %v68_v14 = vmax.f32 %v22_v1, %v66_v13 }
  0x8e   :  { %69 = vrot.lane.b32.xlu1 %v67_v12, %s155_s0 }
  0x92   :  { %71 = vrot.lane.b32.xlu1 %v68_v14, %s155_s0 }
 0x100   :  { %v70_v15 = vpop.permute.xlu1 %69 }
 0x104   :  { %v72_v16 = vpop.permute.xlu1 %71 }
 0x105   :  { %v74_v17 = vsel %vm73_vm3, %v70_v15, %v72_v16  ;;  %v75_v18 = vsel %vm73_vm3, %v72_v16, %v70_v15 }
 0x106   :  { %v81_v19 = vsel %vm53_vm4, %v68_v14, %v75_v18  ;;  %v82_v20 = vmax.f32 %v67_v12, %v74_v17 }
 0x107   :  { %v83_v21 = vmax.f32 %v68_v14, %v81_v19 }
 0x108   :  { %84 = vst [vmem:[#allocation5] sm:$0xff] %v82_v20 }
 0x109   :  { %85 = vst [vmem:[#allocation5 + $0x8] sm:$0xff] %v83_v21 }
 0x10a   :  { %138 = shalt.err (!%p135_p12)
}
 0x10b   :  { %s139_s24 = scalar_lea.hbm %s192_s1, 256 }
 0x10c   :  { %p140_p13 = scmp.ne.s32.totalorder %s192_s1, %s139_s24  ;;  %p143_p0 = scmp.lt.u32.totalorder %s139_s24, %s192_s1 }
 0x10e   :  { %p145_p1 = pnand %p143_p0, %p140_p13 }
 0x110   :  { %148 = shalt.err (!%p145_p1)
}
 0x111   :  { %95 = dma.vmem_to_hbm [thread:$0]  %s93_s20, 256, %s192_s1, [#allocation4]  }
 0x112   :  { %151 = dma.done.wait [#allocation4], 256  }
 0x113   :  { %152 = vsyncadd [#allocation4], 4294967040 }
 0x114   :  { %99 = vsyncpa [#allocation3], 1 }
 0x115   :  { %100 = vsyncpa [#allocation4], 1 }

</bundles_post_ra>
